<compile_context>
chip_gen: v6e
topology: v6e:2x2x1
jax: 0.10.0
libtpu: 0.0.40
codegen_flags: <defaults>
</compile_context>

<pallas_src>
import functools

import jax
import jax.numpy as jnp
from jax.experimental import pallas as pl
from jax.experimental.pallas import tpu as pltpu


def _round_up(n, m):
    return ((n + m - 1) // m) * m


def trunk_kernel(*refs, num_layers, act_dtype):
    """Whole MLP forward for one batch tile — all matmuls + tanh on-chip.

    refs = (x_ref, w1, b1, w2, b2, ..., wL, bL, o_ref)
      x_ref : [tile, P_in]            padded input (f32)
      w_l   : [P_{l-1}, P_l]          per-layer padded weights (matmul dtype)
      b_l   : [1, P_l]                per-layer padded biases (f32)
      o_ref : [tile, P_out]           padded output (P_out = round_up(out,128))
    """
    x_ref = refs[0]
    o_ref = refs[-1]
    wb = refs[1:1 + 2 * num_layers]

    h = x_ref[...]
    for layer in range(num_layers):
        w_ref = wb[2 * layer]
        b_ref = wb[2 * layer + 1]
        z = jnp.dot(h.astype(w_ref.dtype), w_ref[...],
                    preferred_element_type=jnp.float32) + b_ref[...]
        if layer < num_layers - 1:
            h = jnp.tanh(z.astype(act_dtype))   # act_dtype=f32 default (v5e-safe)
        else:
            h = z
    o_ref[...] = h.astype(o_ref.dtype)


def prepare_params(params, matmul_dtype=jnp.bfloat16):
    """Pad each layer to its own lane-dense (multiple-of-128) width, ONCE.

    params: list of (W[in,out] f32, b[1,out] f32).  Zero padding is exact:
    tanh(0)=0 propagates zeros through the padded feature columns.
    """
    prepared = []
    for (w, b) in params:
        p_in = _round_up(w.shape[0], 128)
        p_out = _round_up(w.shape[1], 128)
        wp = jnp.pad(w, ((0, p_in - w.shape[0]), (0, p_out - w.shape[1])))
        bp = jnp.pad(b, ((0, 0), (0, p_out - b.shape[1])))
        prepared.append((wp.astype(matmul_dtype), bp.astype(jnp.float32)))
    return prepared


def trunk_forward(x, prepared, *, out_size, max_batch_tile=1024,
                  min_grid_steps=2, activation_dtype=jnp.float32):
    """x: [B, input_size] f32.  prepared: output of prepare_params()."""
    assert max_batch_tile % 8 == 0
    B, in_size = x.shape
    L = len(prepared)
    p_dims = [prepared[0][0].shape[0]] + [w.shape[1] for (w, _) in prepared]
    P_in, P_out = p_dims[0], p_dims[-1]

    # Batch tiling: one big tile when it fits, but at least `min_grid_steps`
    # parallel steps (>=8 rows each) so both TCs are used on v7x.
    b8 = _round_up(B, 8)
    if b8 <= max_batch_tile:
        steps = max(1, min(min_grid_steps, b8 // 8))
        tile = _round_up(-(-b8 // steps), 8)
    else:
        tile = max_batch_tile
    Bp = _round_up(B, tile)

    # Pad batch rows and input feature columns (zeros are inert).
    x_pad = jnp.pad(x, ((0, Bp - B), (0, P_in - in_size)))

    # BlockSpecs: streamed x / out tiles; weights & biases full-extent,
    # constant index_map, single-buffered (Buffered(1)) -> one VMEM copy.
    in_specs = [pl.BlockSpec((tile, P_in), lambda i: (i, 0))]
    flat_wb = []
    for (w, b) in prepared:
        in_specs.append(pl.BlockSpec(w.shape, lambda i: (0, 0),
                                     pipeline_mode=pl.Buffered(1)))
        in_specs.append(pl.BlockSpec(b.shape, lambda i: (0, 0),
                                     pipeline_mode=pl.Buffered(1)))
        flat_wb.extend((w, b))

    # VMEM budget from the actual buffers (weights single-buffered, x/out
    # double-buffered, slack for the inter-layer intermediates).
    mm_item = jnp.dtype(prepared[0][0].dtype).itemsize
    w_bytes = sum(w.size * mm_item for (w, _) in prepared)
    b_bytes = sum(b.size * 4 for (_, b) in prepared)
    io_bytes = 2 * tile * (P_in + P_out) * 4
    act_bytes = 3 * tile * max(p_dims) * 4
    est = w_bytes + b_bytes + io_bytes + act_bytes
    vmem_limit = int(min(max(2 * est, 32 << 20), 64 << 20))  # cap for v7x (64 MiB)

    out_padded = pl.pallas_call(
        functools.partial(trunk_kernel, num_layers=L, act_dtype=activation_dtype),
        out_shape=jax.ShapeDtypeStruct((Bp, P_out), x.dtype),
        grid_spec=pl.GridSpec(
            grid=(Bp // tile,),
            in_specs=in_specs,
            out_specs=pl.BlockSpec((tile, P_out), lambda i: (i, 0)),
        ),
        compiler_params=pltpu.CompilerParams(
            dimension_semantics=("parallel",),
            vmem_limit_bytes=vmem_limit),
    )(x_pad, *flat_wb)

    return out_padded[:B, :out_size]


def init_params(key, input_size, hidden_size, output_size):
    """Deterministic init mirroring nn.Linear shapes (W stored as [in, out])."""
    dims = [input_size, hidden_size, hidden_size // 2,
            hidden_size // 4, hidden_size // 8, output_size]
    params = []
    for (fan_in, fan_out) in zip(dims[:-1], dims[1:]):
        key, wk, bk = jax.random.split(key, 3)
        bound = 1.0 / jnp.sqrt(fan_in)
        w = jax.random.uniform(wk, (fan_in, fan_out), jnp.float32, -bound, bound)
        b = jax.random.uniform(bk, (1, fan_out), jnp.float32, -bound, bound)
        params.append((w, b))
    return params


def trunk_reference(x, params, matmul_dtype=jnp.float32):
    """Pure-JAX reference; matmul_dtype simulates the kernel's operand cast."""
    h = x
    L = len(params)
    for i, (w, b) in enumerate(params):
        z = jnp.dot(h.astype(matmul_dtype), w.astype(matmul_dtype),
                    preferred_element_type=jnp.float32) + b
        h = jnp.tanh(z) if i < L - 1 else z
    return h


if __name__ == "__main__":
    key = jax.random.PRNGKey(0)

    input_size, hidden_size, output_size = 16, 64, 8
    batch = 16

    pkey, xkey = jax.random.split(key)
    params = init_params(pkey, input_size, hidden_size, output_size)
    x = jax.random.normal(xkey, (batch, input_size), jnp.float32)

    # Pad/cast weights ONCE (hoisted out of the per-call path). bf16 operands
    # hit the native MXU path on v5e/v6e/v7x; accumulation stays f32.
    prepared = prepare_params(params, matmul_dtype=jnp.bfloat16)

    fwd = jax.jit(functools.partial(trunk_forward, out_size=output_size))
    out = jax.block_until_ready(fwd(x, prepared))

    assert out.shape == (batch, output_size)
    ref_sim = trunk_reference(x, params, matmul_dtype=jnp.bfloat16)  # same operand precision
    ref_f32 = trunk_reference(x, params, matmul_dtype=jnp.float32)
    assert jnp.allclose(out, ref_sim, atol=1e-3, rtol=1e-3), "mismatch vs bf16-operand reference"
    assert jnp.allclose(out, ref_f32, atol=5e-2, rtol=5e-2), "mismatch vs f32 reference"

    print("KERNEL_OK")
</pallas_src>

<mosaic_0001>
module attributes {stable_mosaic.version = 11 : i64} {
  func.func @trunk_kernel(%arg0: i32, %arg1: memref<8x128xf32, #tpu.memory_space<vmem>>, %arg2: memref<128x128xbf16, #tpu.memory_space<vmem>>, %arg3: memref<1x128xf32, #tpu.memory_space<vmem>>, %arg4: memref<128x128xbf16, #tpu.memory_space<vmem>>, %arg5: memref<1x128xf32, #tpu.memory_space<vmem>>, %arg6: memref<128x128xbf16, #tpu.memory_space<vmem>>, %arg7: memref<1x128xf32, #tpu.memory_space<vmem>>, %arg8: memref<128x128xbf16, #tpu.memory_space<vmem>>, %arg9: memref<1x128xf32, #tpu.memory_space<vmem>>, %arg10: memref<128x128xbf16, #tpu.memory_space<vmem>>, %arg11: memref<1x128xf32, #tpu.memory_space<vmem>>, %arg12: memref<8x128xf32, #tpu.memory_space<vmem>>) attributes {dimension_semantics = [#tpu.dimension_semantics<parallel>], iteration_bounds = array<i64: 2>, scalar_prefetch = 0 : i64, scratch_operands = 0 : i64, tpu.core_type = #tpu.core_type<tc>, window_params = [{transform_indices = @transform_0, window_bounds = array<i64: 8, 128>}, {pipeline_mode = #tpu.pipeline_mode<synchronous>, transform_indices = @transform_1, window_bounds = array<i64: 128, 128>}, {pipeline_mode = #tpu.pipeline_mode<synchronous>, transform_indices = @transform_2, window_bounds = array<i64: 1, 128>}, {pipeline_mode = #tpu.pipeline_mode<synchronous>, transform_indices = @transform_3, window_bounds = array<i64: 128, 128>}, {pipeline_mode = #tpu.pipeline_mode<synchronous>, transform_indices = @transform_4, window_bounds = array<i64: 1, 128>}, {pipeline_mode = #tpu.pipeline_mode<synchronous>, transform_indices = @transform_5, window_bounds = array<i64: 128, 128>}, {pipeline_mode = #tpu.pipeline_mode<synchronous>, transform_indices = @transform_6, window_bounds = array<i64: 1, 128>}, {pipeline_mode = #tpu.pipeline_mode<synchronous>, transform_indices = @transform_7, window_bounds = array<i64: 128, 128>}, {pipeline_mode = #tpu.pipeline_mode<synchronous>, transform_indices = @transform_8, window_bounds = array<i64: 1, 128>}, {pipeline_mode = #tpu.pipeline_mode<synchronous>, transform_indices = @transform_9, window_bounds = array<i64: 128, 128>}, {pipeline_mode = #tpu.pipeline_mode<synchronous>, transform_indices = @transform_10, window_bounds = array<i64: 1, 128>}, {transform_indices = @transform_11, window_bounds = array<i64: 8, 128>}]} {
    %c0 = arith.constant 0 : index
    %c0_0 = arith.constant 0 : index
    %0 = vector.load %arg1[%c0, %c0_0] : memref<8x128xf32, #tpu.memory_space<vmem>>, vector<8x128xf32>
    %1 = arith.truncf %0 : vector<8x128xf32> to vector<8x128xbf16>
    %c0_1 = arith.constant 0 : index
    %c0_2 = arith.constant 0 : index
    %2 = vector.load %arg2[%c0_1, %c0_2] : memref<128x128xbf16, #tpu.memory_space<vmem>>, vector<128x128xbf16>
    %cst = arith.constant dense<0.000000e+00> : vector<8x128xf32>
    %3 = tpu.matmul %1, %2, %cst {dimension_numbers = #tpu.dot_dimension_numbers<[1], [0], [0], [1], [0, 0, 1, 1], [], []>} : vector<8x128xbf16>, vector<128x128xbf16>, vector<8x128xf32> -> vector<8x128xf32>
    %c0_3 = arith.constant 0 : index
    %c0_4 = arith.constant 0 : index
    %4 = vector.load %arg3[%c0_3, %c0_4] : memref<1x128xf32, #tpu.memory_space<vmem>>, vector<1x128xf32>
    %5 = vector.broadcast %4 : vector<1x128xf32> to vector<8x128xf32>
    %6 = arith.addf %3, %5 : vector<8x128xf32>
    %7 = math.tanh %6 : vector<8x128xf32>
    %8 = arith.truncf %7 : vector<8x128xf32> to vector<8x128xbf16>
    %c0_5 = arith.constant 0 : index
    %c0_6 = arith.constant 0 : index
    %9 = vector.load %arg4[%c0_5, %c0_6] : memref<128x128xbf16, #tpu.memory_space<vmem>>, vector<128x128xbf16>
    %cst_7 = arith.constant dense<0.000000e+00> : vector<8x128xf32>
    %10 = tpu.matmul %8, %9, %cst_7 {dimension_numbers = #tpu.dot_dimension_numbers<[1], [0], [0], [1], [0, 0, 1, 1], [], []>} : vector<8x128xbf16>, vector<128x128xbf16>, vector<8x128xf32> -> vector<8x128xf32>
    %c0_8 = arith.constant 0 : index
    %c0_9 = arith.constant 0 : index
    %11 = vector.load %arg5[%c0_8, %c0_9] : memref<1x128xf32, #tpu.memory_space<vmem>>, vector<1x128xf32>
    %12 = vector.broadcast %11 : vector<1x128xf32> to vector<8x128xf32>
    %13 = arith.addf %10, %12 : vector<8x128xf32>
    %14 = math.tanh %13 : vector<8x128xf32>
    %15 = arith.truncf %14 : vector<8x128xf32> to vector<8x128xbf16>
    %c0_10 = arith.constant 0 : index
    %c0_11 = arith.constant 0 : index
    %16 = vector.load %arg6[%c0_10, %c0_11] : memref<128x128xbf16, #tpu.memory_space<vmem>>, vector<128x128xbf16>
    %cst_12 = arith.constant dense<0.000000e+00> : vector<8x128xf32>
    %17 = tpu.matmul %15, %16, %cst_12 {dimension_numbers = #tpu.dot_dimension_numbers<[1], [0], [0], [1], [0, 0, 1, 1], [], []>} : vector<8x128xbf16>, vector<128x128xbf16>, vector<8x128xf32> -> vector<8x128xf32>
    %c0_13 = arith.constant 0 : index
    %c0_14 = arith.constant 0 : index
    %18 = vector.load %arg7[%c0_13, %c0_14] : memref<1x128xf32, #tpu.memory_space<vmem>>, vector<1x128xf32>
    %19 = vector.broadcast %18 : vector<1x128xf32> to vector<8x128xf32>
    %20 = arith.addf %17, %19 : vector<8x128xf32>
    %21 = math.tanh %20 : vector<8x128xf32>
    %22 = arith.truncf %21 : vector<8x128xf32> to vector<8x128xbf16>
    %c0_15 = arith.constant 0 : index
    %c0_16 = arith.constant 0 : index
    %23 = vector.load %arg8[%c0_15, %c0_16] : memref<128x128xbf16, #tpu.memory_space<vmem>>, vector<128x128xbf16>
    %cst_17 = arith.constant dense<0.000000e+00> : vector<8x128xf32>
    %24 = tpu.matmul %22, %23, %cst_17 {dimension_numbers = #tpu.dot_dimension_numbers<[1], [0], [0], [1], [0, 0, 1, 1], [], []>} : vector<8x128xbf16>, vector<128x128xbf16>, vector<8x128xf32> -> vector<8x128xf32>
    %c0_18 = arith.constant 0 : index
    %c0_19 = arith.constant 0 : index
    %25 = vector.load %arg9[%c0_18, %c0_19] : memref<1x128xf32, #tpu.memory_space<vmem>>, vector<1x128xf32>
    %26 = vector.broadcast %25 : vector<1x128xf32> to vector<8x128xf32>
    %27 = arith.addf %24, %26 : vector<8x128xf32>
    %28 = math.tanh %27 : vector<8x128xf32>
    %29 = arith.truncf %28 : vector<8x128xf32> to vector<8x128xbf16>
    %c0_20 = arith.constant 0 : index
    %c0_21 = arith.constant 0 : index
    %30 = vector.load %arg10[%c0_20, %c0_21] : memref<128x128xbf16, #tpu.memory_space<vmem>>, vector<128x128xbf16>
    %cst_22 = arith.constant dense<0.000000e+00> : vector<8x128xf32>
    %31 = tpu.matmul %29, %30, %cst_22 {dimension_numbers = #tpu.dot_dimension_numbers<[1], [0], [0], [1], [0, 0, 1, 1], [], []>} : vector<8x128xbf16>, vector<128x128xbf16>, vector<8x128xf32> -> vector<8x128xf32>
    %c0_23 = arith.constant 0 : index
    %c0_24 = arith.constant 0 : index
    %32 = vector.load %arg11[%c0_23, %c0_24] : memref<1x128xf32, #tpu.memory_space<vmem>>, vector<1x128xf32>
    %33 = vector.broadcast %32 : vector<1x128xf32> to vector<8x128xf32>
    %34 = arith.addf %31, %33 : vector<8x128xf32>
    %c0_25 = arith.constant 0 : index
    %c0_26 = arith.constant 0 : index
    %35 = vector.load %arg12[%c0_25, %c0_26] : memref<8x128xf32, #tpu.memory_space<vmem>>, vector<8x128xf32>
    tpu.vector_store %arg12[%c0_25, %c0_26], %34 {strides = array<i32>} : memref<8x128xf32, #tpu.memory_space<vmem>>, vector<8x128xf32>,
    return
  }
  func.func @transform_0(%arg0: i32) -> (i32, i32) {
    %c0_i32 = arith.constant 0 : i32
    %c0_i32_0 = arith.constant 0 : i32
    return %arg0, %c0_i32 : i32, i32
  }
  func.func @transform_1(%arg0: i32) -> (i32, i32) {
    %c0_i32 = arith.constant 0 : i32
    %c0_i32_0 = arith.constant 0 : i32
    %c0_i32_1 = arith.constant 0 : i32
    return %c0_i32, %c0_i32_0 : i32, i32
  }
  func.func @transform_2(%arg0: i32) -> (i32, i32) {
    %c0_i32 = arith.constant 0 : i32
    %c0_i32_0 = arith.constant 0 : i32
    %c0_i32_1 = arith.constant 0 : i32
    return %c0_i32, %c0_i32_0 : i32, i32
  }
  func.func @transform_3(%arg0: i32) -> (i32, i32) {
    %c0_i32 = arith.constant 0 : i32
    %c0_i32_0 = arith.constant 0 : i32
    %c0_i32_1 = arith.constant 0 : i32
    return %c0_i32, %c0_i32_0 : i32, i32
  }
  func.func @transform_4(%arg0: i32) -> (i32, i32) {
    %c0_i32 = arith.constant 0 : i32
    %c0_i32_0 = arith.constant 0 : i32
    %c0_i32_1 = arith.constant 0 : i32
    return %c0_i32, %c0_i32_0 : i32, i32
  }
  func.func @transform_5(%arg0: i32) -> (i32, i32) {
    %c0_i32 = arith.constant 0 : i32
    %c0_i32_0 = arith.constant 0 : i32
    %c0_i32_1 = arith.constant 0 : i32
    return %c0_i32, %c0_i32_0 : i32, i32
  }
  func.func @transform_6(%arg0: i32) -> (i32, i32) {
    %c0_i32 = arith.constant 0 : i32
    %c0_i32_0 = arith.constant 0 : i32
    %c0_i32_1 = arith.constant 0 : i32
    return %c0_i32, %c0_i32_0 : i32, i32
  }
  func.func @transform_7(%arg0: i32) -> (i32, i32) {
    %c0_i32 = arith.constant 0 : i32
    %c0_i32_0 = arith.constant 0 : i32
    %c0_i32_1 = arith.constant 0 : i32
    return %c0_i32, %c0_i32_0 : i32, i32
  }
  func.func @transform_8(%arg0: i32) -> (i32, i32) {
    %c0_i32 = arith.constant 0 : i32
    %c0_i32_0 = arith.constant 0 : i32
    %c0_i32_1 = arith.constant 0 : i32
    return %c0_i32, %c0_i32_0 : i32, i32
  }
  func.func @transform_9(%arg0: i32) -> (i32, i32) {
    %c0_i32 = arith.constant 0 : i32
    %c0_i32_0 = arith.constant 0 : i32
    %c0_i32_1 = arith.constant 0 : i32
    return %c0_i32, %c0_i32_0 : i32, i32
  }
  func.func @transform_10(%arg0: i32) -> (i32, i32) {
    %c0_i32 = arith.constant 0 : i32
    %c0_i32_0 = arith.constant 0 : i32
    %c0_i32_1 = arith.constant 0 : i32
    return %c0_i32, %c0_i32_0 : i32, i32
  }
  func.func @transform_11(%arg0: i32) -> (i32, i32) {
    %c0_i32 = arith.constant 0 : i32
    %c0_i32_0 = arith.constant 0 : i32
    return %arg0, %c0_i32 : i32, i32
  }
}

</mosaic_0001>

<bundles_post_ra>
// kernel: trunk_forward.1
= control target key start
LH: loop header
LB: loop body
LE: loop exit
PB: predicated region body
PF: predicated region fallthrough
CT: control target
= control target key end

     0   :  { %16 = vsyncpa [#allocation3], 0  ;;  %s1857_s0 = inlined_call_operand.vmem [shape: f32[16,128], index: 0, kind: input, shape index: {}]   ;;  %s1858_s1 = inlined_call_operand.hbm [shape: bf16[128,128], index: 1, kind: input, shape index: {}]   ;;  %s1859_s2 = inlined_call_operand.vmem [shape: f32[1,128], index: 2, kind: input, shape index: {}]   ;;  %s1860_s3 = inlined_call_operand.hbm [shape: bf16[128,128], index: 3, kind: input, shape index: {}]   ;;  %s1861_s4 = inlined_call_operand.vmem [shape: f32[1,128], index: 4, kind: input, shape index: {}]   ;;  %s1862_s5 = inlined_call_operand.hbm [shape: bf16[128,128], index: 5, kind: input, shape index: {}]   ;;  %s1863_s6 = inlined_call_operand.vmem [shape: f32[1,128], index: 6, kind: input, shape index: {}]   ;;  %s1864_s7 = inlined_call_operand.hbm [shape: bf16[128,128], index: 7, kind: input, shape index: {}]   ;;  %s1865_s8 = inlined_call_operand.vmem [shape: f32[1,128], index: 8, kind: input, shape index: {}]   ;;  %s1866_s9 = inlined_call_operand.hbm [shape: bf16[128,128], index: 9, kind: input, shape index: {}]   ;;  %s1867_s10 = inlined_call_operand.vmem [shape: f32[1,128], index: 10, kind: input, shape index: {}]   ;;  %s1868_s11 = inlined_call_operand.vmem [shape: f32[16,128], index: 11, kind: output, shape index: {}]  }
   0x1   :  { %17 = vsyncpa [#allocation5], 0 }
   0x2   :  { %18 = vsyncpa [#allocation8], 0  ;;  %s1664_s17 = smov 0  }
   0x3 LB: > { %s1670_s18 = sadd.s32 4294967295, %s1593_s17   ;;  %p1127_p0 = scmp.ge.s32.totalorder %s1593_s17, 1  ;;  %s1593_s17 = sphi %s1664_s17, %s24_s17  }
   0x4   : > { %p291_p1 = scmp.lt.s32.totalorder %s1593_s17, 3  ;;  %p1370_p2 = scmp.eq.s32.totalorder %s1670_s18, 0 }
   0x5   : > { %s1595_s20 = smov [#allocation4]   ;;  %s1596_s22 = smov [#allocation7]  }
   0x6   : > { %p1675_p3 = pnand %p1127_p0, %p291_p1  ;;  %s319_s21 = sshll.u32 %s1595_s20, 4  ;;  %s320_s21 = int_to_ptr.vmem [resolvable:$true] %s319_s21 }
   0x7   : > { %s351_s23 = sshll.u32 %s1596_s22, 4  ;;  %s1597_s25 = smov [#allocation2]   ;;  %s1681_s23 = int_to_ptr.vmem [resolvable:$true] %s351_s23 }
   0x8   : > { %p1354_p4 = pneg %p1675_p3  ;;  %s303_s26 = sshll.u32 %s1597_s25, 4  ;;  %s1689_s26 = int_to_ptr.vmem [resolvable:$true] %s303_s26 }
   0x9   : > { %s1598_s27 = smov [#allocation6]   ;;  %s1456_s30 = scalar_lea.vmem %s320_s21, 1024 }
   0xa   : > { %p1685_p5 = pnand %p1370_p2, %p1354_p4  ;;  %s1691_s28 = sshll.u32 %s1598_s27, 4  ;;  %s336_s28 = int_to_ptr.vmem [resolvable:$true] %s1691_s28 }
   0xb   : > { %p1457_p7 = scmp.ne.s32.totalorder %s320_s21, %s1456_s30  ;;  %p1464_p10 = scmp.lt.s32.totalorder %s320_s21, %s320_s21 }
   0xc   : > { %p1695_p6 = pneg %p1685_p5  ;;  %p1465_p11 = scmp.lt.s32.totalorder %s1456_s30, %s1456_s30 }
   0xe   : > { %p1459_p8 = pnand %p1457_p7, %p1695_p6  ;;  %p1466_p12 = por %p1465_p11, %p1464_p10 }
  0x10   : > { %p1460_p9 = pneg %p1459_p8 }
  0x12   : > { %p1467_p13 = pnand %p1466_p12, %p1460_p9 }
  0x14   : > { %1470 = shalt.err (!%p1467_p13)
}
  0x15   : > { %s1599_s12 = smov 64   ;;  %s1600_s13 = smov 4  }
  0x16   : > { %1360 = dma.hbm_to_vmem [thread:$0]  (!%p1685_p5), %s1860_s3, 1024, %s320_s21, [#allocation5], %s1599_s12, %s1599_s12, %s1600_s13  }
  0x17   : > { %s1482_s16 = scalar_lea.vmem %s1681_s23, 1024  ;;  %p1490_p7 = scmp.lt.s32.totalorder %s1681_s23, %s1681_s23 }
  0x18   : > { %p1483_p0 = scmp.ne.s32.totalorder %s1681_s23, %s1482_s16  ;;  %p1491_p8 = scmp.lt.s32.totalorder %s1482_s16, %s1482_s16 }
  0x1a   : > { %p1485_p1 = pnand %p1483_p0, %p1695_p6  ;;  %p1492_p9 = por %p1491_p8, %p1490_p7 }
  0x1c   : > { %p1486_p4 = pneg %p1485_p1 }
  0x1e   : > { %p1493_p10 = pnand %p1492_p9, %p1486_p4 }
  0x20   : > { %1496 = shalt.err (!%p1493_p10)
}
  0x21   : > { %1366 = dma.hbm_to_vmem [thread:$0]  (!%p1685_p5), %s1864_s7, 1024, %s1681_s23, [#allocation8], %s1599_s12, %s1599_s12, %s1600_s13  }
  0x22   : > { %s1508_s21 = scalar_lea.vmem %s1689_s26, 1024  ;;  %p1516_p0 = scmp.lt.s32.totalorder %s1689_s26, %s1689_s26 }
  0x23   : > { %p1509_p11 = scmp.ne.s32.totalorder %s1689_s26, %s1508_s21  ;;  %p1517_p1 = scmp.lt.s32.totalorder %s1508_s21, %s1508_s21 }
  0x25   : > { %p1511_p12 = pnand %p1509_p11, %p1695_p6  ;;  %p1518_p4 = por %p1517_p1, %p1516_p0 }
  0x27   : > { %p1512_p13 = pneg %p1511_p12 }
  0x29   : > { %p1519_p7 = pnand %p1518_p4, %p1512_p13 }
  0x2b   : > { %1522 = shalt.err (!%p1519_p7)
}
  0x2c   : > { %1357 = dma.hbm_to_vmem [thread:$0]  (!%p1685_p5), %s1858_s1, 1024, %s1689_s26, [#allocation3], %s1599_s12, %s1599_s12, %s1600_s13  }
  0x2d   : > { %s1534_s23 = scalar_lea.vmem %s336_s28, 1024  ;;  %p1542_p11 = scmp.lt.s32.totalorder %s336_s28, %s336_s28 }
  0x2e   : > { %p1535_p8 = scmp.ne.s32.totalorder %s336_s28, %s1534_s23  ;;  %p1543_p12 = scmp.lt.s32.totalorder %s1534_s23, %s1534_s23 }
  0x30   : > { %p1537_p9 = pnand %p1535_p8, %p1695_p6  ;;  %p1544_p13 = por %p1543_p12, %p1542_p11 }
  0x32   : > { %p1538_p10 = pneg %p1537_p9 }
  0x34   : > { %p1545_p0 = pnand %p1544_p13, %p1538_p10 }
  0x36   : > { %1548 = shalt.err (!%p1545_p0)
}
  0x37   : > { %1363 = dma.hbm_to_vmem [thread:$0]  (!%p1685_p5), %s1862_s5, 1024, %s336_s28, [#allocation5], %s1599_s12, %s1599_s12, %s1600_s13  }
  0x38   : > { %s1601_s26 = smov [#allocation9]  }
  0x39   : > { %s367_s15 = sshll.u32 %s1601_s26, 4  ;;  %s368_s15 = int_to_ptr.vmem [resolvable:$true] %s367_s15 }
  0x3a   : > { %s1560_s16 = scalar_lea.vmem %s368_s15, 1024  ;;  %p1568_p8 = scmp.lt.s32.totalorder %s368_s15, %s368_s15 }
  0x3b   : > { %p1561_p1 = scmp.ne.s32.totalorder %s368_s15, %s1560_s16  ;;  %p1569_p9 = scmp.lt.s32.totalorder %s1560_s16, %s1560_s16 }
  0x3d   : > { %p1563_p4 = pnand %p1561_p1, %p1695_p6  ;;  %p1570_p10 = por %p1569_p9, %p1568_p8 }
  0x3f   : > { %p1564_p7 = pneg %p1563_p4 }
  0x41   : > { %p1571_p11 = pnand %p1570_p10, %p1564_p7 }
  0x43   : > { %1574 = shalt.err (!%p1571_p11)
}
  0x44   : > { %1369 = dma.hbm_to_vmem [thread:$0]  (!%p1685_p5), %s1866_s9, 1024, %s368_s15, [#allocation8], %s1599_s12, %s1599_s12, %s1600_s13  }
  0x45   : > { %393 = sbr.rel (%p1675_p3) target bundleno = 1156 (0x484), region = 64 }
  0x4a   : > { %1580 = dma.done.wait (%p1370_p2), [#allocation3], 1024  }
  0x4b   : > { %1582 = vsyncadd (%p1370_p2), [#allocation3], 4294966272 }
  0x4c   : > { %1584 = dma.done.wait (%p1370_p2), [#allocation5], 2048  }
  0x4d   : > { %1586 = vsyncadd (%p1370_p2), [#allocation5], 4294965248 }
  0x4e   : > { %1588 = dma.done.wait (%p1370_p2), [#allocation8], 2048  }
  0x4f   : > { %1590 = vsyncadd (%p1370_p2), [#allocation8], 4294965248  ;;  %v1602_v0 = vmov 0.0   ;;  %vm1603_vm0 = vmmov 0   ;;  %v1397_v1 = vld [vmem:[#allocation2 + $0x38] sm:$0xff]   ;;  %v1398_v2 = vld [vmem:[#allocation2 + $0x30] sm:$0xff]  }
  0x50   : > { %1234 = vmatprep.subr.bf16.mxu0 %v1602_v0  ;;  %1250 = vmatprep.mubr.msk.bf16.mxu0 %vm1603_vm0, %v1602_v0  ;;  %p447_p2 = scmp.lt.s32.totalorder %s1670_s18, 1  ;;  %v1399_v3 = vld [vmem:[#allocation2 + $0x28] sm:$0xff]   ;;  %v1405_v4 = vld [vmem:[#allocation4 + $0x38] sm:$0xff]   ;;  %v1400_v5 = vld [vmem:[#allocation2 + $0x20] sm:$0xff]  }
  0x51   : > { %1254 = vmatprep.subr.bf16.mxu1 %v1602_v0  ;;  %1270 = vmatprep.mubr.msk.bf16.mxu1 %vm1603_vm0, %v1602_v0  ;;  %v1406_v6 = vld [vmem:[#allocation4 + $0x30] sm:$0xff]   ;;  %v1401_v7 = vld [vmem:[#allocation2 + $0x18] sm:$0xff]   ;;  %v1407_v8 = vld [vmem:[#allocation4 + $0x28] sm:$0xff]  }
  0x52   : > { %1235 = vmatpush3.bf16.msra.mxu0 %v1397_v1  ;;  %s1873_s18 = smov (!%p447_p2, %s1670_s18), 1  ;;  %1255 = vmatpush3.bf16.msra.mxu1 %v1405_v4  ;;  %v1402_v9 = vld [vmem:[#allocation2 + $0x10] sm:$0xff]   ;;  %v1403_v10 = vld [vmem:[#allocation2 + $0x8] sm:$0xff]   ;;  %v1404_v11 = vld [vmem:[#allocation2] sm:$0xff]  }
  0x53   : > { %1236 = vmatprep.subr.bf16.mxu0 %v1602_v0  ;;  %s1140_s19 = sshll.u32 %s1873_s18, 3  ;;  %1256 = vmatprep.subr.bf16.mxu1 %v1602_v0  ;;  %v1408_v14 = vld [vmem:[#allocation4 + $0x20] sm:$0xff]   ;;  %v1409_v15 = vld [vmem:[#allocation4 + $0x18] sm:$0xff]   ;;  %v1410_v16 = vld [vmem:[#allocation4 + $0x10] sm:$0xff]  }
  0x54   : > { %s450_s12 = scalar_lea.vmem %s1857_s0, %s1140_s19  ;;  %v1411_v17 = vld [vmem:[#allocation4 + $0x8] sm:$0xff]   ;;  %v1412_v18 = vld [vmem:[#allocation4] sm:$0xff]   ;;  %v1413_v19 = vld [vmem:[#allocation6 + $0x38] sm:$0xff]   ;;  %s454_s28 = scalar_lea.vmem %s1868_s11, %s1140_s19 }
  0x55   : > { %v456_v12 = vld [vmem:[%s450_s12] sm:$0xff]  ;;  %v1414_v20 = vld [vmem:[#allocation6 + $0x30] sm:$0xff]   ;;  %v1415_v21 = vld [vmem:[#allocation6 + $0x28] sm:$0xff]  }
  0x56   : > { %1237 = vmatpush3.bf16.msra.mxu0 %v1398_v2  ;;  %1257 = vmatpush3.bf16.msra.mxu1 %v1406_v6  ;;  %v457_v13 = vpack.c.bf16 %v456_v12, %v456_v12  ;;  %v1142_v22 = vld [vmem:[%s1859_s2] ss:$0 sm:$0xff]  ;;  %v1417_v31 = vld [vmem:[#allocation6 + $0x18] sm:$0xff]   ;;  %v1418_v32 = vld [vmem:[#allocation6 + $0x10] sm:$0xff]  }
  0x57   : > { %1238 = vmatprep.subr.bf16.mxu0 %v1602_v0  ;;  %1258 = vmatprep.subr.bf16.mxu1 %v1602_v0  ;;  %v1416_v30 = vld [vmem:[#allocation6 + $0x20] sm:$0xff]   ;;  %v1419_v33 = vld [vmem:[#allocation6 + $0x8] sm:$0xff]   ;;  %v1421_v35 = vld [vmem:[#allocation7 + $0x38] sm:$0xff]  }
  0x58   : > { %v1420_v34 = vld [vmem:[#allocation6] sm:$0xff]   ;;  %v1422_v36 = vld [vmem:[#allocation7 + $0x30] sm:$0xff]   ;;  %v1423_v37 = vld [vmem:[#allocation7 + $0x28] sm:$0xff]  }
  0x59   : > { %v1151_v38 = vld [vmem:[%s1861_s4] ss:$0 sm:$0xff]  ;;  %v1425_v47 = vld [vmem:[#allocation7 + $0x18] sm:$0xff]   ;;  %v1426_v48 = vld [vmem:[#allocation7 + $0x10] sm:$0xff]  }
  0x5a   : > { %1239 = vmatpush3.bf16.msra.mxu0 %v1399_v3  ;;  %1259 = vmatpush3.bf16.msra.mxu1 %v1407_v8  ;;  %v1424_v46 = vld [vmem:[#allocation7 + $0x20] sm:$0xff]   ;;  %v1427_v49 = vld [vmem:[#allocation7 + $0x8] sm:$0xff]   ;;  %v1429_v51 = vld [vmem:[#allocation9 + $0x38] sm:$0xff]  }
  0x5b   : > { %1240 = vmatprep.subr.bf16.mxu0 %v1602_v0  ;;  %1260 = vmatprep.subr.bf16.mxu1 %v1602_v0  ;;  %v1428_v50 = vld [vmem:[#allocation7] sm:$0xff]   ;;  %v1430_v52 = vld [vmem:[#allocation9 + $0x30] sm:$0xff]   ;;  %v1431_v53 = vld [vmem:[#allocation9 + $0x28] sm:$0xff]  }
  0x5c   : > { %v1160_v54 = vld [vmem:[%s1863_s6] ss:$0 sm:$0xff]  ;;  %v1433_v63 = vld [vmem:[#allocation9 + $0x18] sm:$0xff]   ;;  %v1434_v1 = vld [vmem:[#allocation9 + $0x10] sm:$0xff]  }
  0x5d   : > { %v1432_v62 = vld [vmem:[#allocation9 + $0x20] sm:$0xff]   ;;  %v1435_v2 = vld [vmem:[#allocation9 + $0x8] sm:$0xff]  }
  0x5e   : > { %1241 = vmatpush3.bf16.msra.mxu0 %v1400_v5  ;;  %1261 = vmatpush3.bf16.msra.mxu1 %v1408_v14  ;;  %v1436_v3 = vld [vmem:[#allocation9] sm:$0xff]  }
  0x5f   : > { %1242 = vmatprep.subr.bf16.mxu0 %v1602_v0  ;;  %1262 = vmatprep.subr.bf16.mxu1 %v1602_v0  ;;  %v1169_v4 = vld [vmem:[%s1865_s8] ss:$0 sm:$0xff] }
  0x60   : > { %v1178_v12 = vld [vmem:[%s1867_s10] ss:$0 sm:$0xff] }
  0x62   : > { %1243 = vmatpush3.bf16.msra.mxu0 %v1401_v7  ;;  %1263 = vmatpush3.bf16.msra.mxu1 %v1409_v15 }
  0x63   : > { %1244 = vmatprep.subr.bf16.mxu0 %v1602_v0  ;;  %1264 = vmatprep.subr.bf16.mxu1 %v1602_v0 }
  0x66   : > { %1245 = vmatpush3.bf16.msra.mxu0 %v1402_v9  ;;  %1265 = vmatpush3.bf16.msra.mxu1 %v1410_v16 }
  0x67   : > { %1246 = vmatprep.subr.bf16.mxu0 %v1602_v0  ;;  %1266 = vmatprep.subr.bf16.mxu1 %v1602_v0 }
  0x6a   : > { %1247 = vmatpush3.bf16.msra.mxu0 %v1403_v10  ;;  %1267 = vmatpush3.bf16.msra.mxu1 %v1411_v17 }
  0x6b   : > { %1248 = vmatprep.subr.bf16.mxu0 %v1602_v0  ;;  %1268 = vmatprep.subr.bf16.mxu1 %v1602_v0 }
  0x6e   : > { %1249 = vmatpush3.bf16.msra.mxu0 %v1404_v11  ;;  %1269 = vmatpush3.bf16.msra.mxu1 %v1412_v18 }
  0x6f   : > { %1274 = vmatprep.subr.bf16.mxu0 %v1602_v0  ;;  %1294 = vmatprep.subr.bf16.mxu1 %v1602_v0 }
  0x71   : > { %1251 = vmatmul.mubr.bf16.vlgmr.msra.gmra.mxu0 %v457_v13 }
  0x72   : > { %1290 = vmatprep.mubr.msk.bf16.mxu0 %vm1603_vm0, %v1602_v0  ;;  %1275 = vmatpush3.bf16.msra.mxu0 %v1413_v19 }
  0x73   : > { %1276 = vmatprep.subr.bf16.mxu0 %v1602_v0 }
  0x76   : > { %1277 = vmatpush3.bf16.msra.mxu0 %v1414_v20 }
  0x77   : > { %1278 = vmatprep.subr.bf16.mxu0 %v1602_v0 }
  0x7a   : > { %1279 = vmatpush3.bf16.msra.mxu0 %v1415_v21 }
  0x7b   : > { %1280 = vmatprep.subr.bf16.mxu0 %v1602_v0 }
  0x7e   : > { %1281 = vmatpush3.bf16.msra.mxu0 %v1416_v30 }
  0x7f   : > { %1282 = vmatprep.subr.bf16.mxu0 %v1602_v0 }
  0x82   : > { %1283 = vmatpush3.bf16.msra.mxu0 %v1417_v31 }
  0x83   : > { %1284 = vmatprep.subr.bf16.mxu0 %v1602_v0 }
  0x86   : > { %1285 = vmatpush3.bf16.msra.mxu0 %v1418_v32 }
  0x87   : > { %1286 = vmatprep.subr.bf16.mxu0 %v1602_v0 }
  0x8a   : > { %1287 = vmatpush3.bf16.msra.mxu0 %v1419_v33 }
  0x8b   : > { %1288 = vmatprep.subr.bf16.mxu0 %v1602_v0 }
  0x8e   : > { %1289 = vmatpush3.bf16.msra.mxu0 %v1420_v34 }
  0x8f   : > { %1314 = vmatprep.subr.bf16.mxu0 %v1602_v0 }
 0x131   : > { %v563_v23 = vpop.f32.mrf.mxu0 }
 0x132   : > { %v564_v24 = vadd.f32 %v1142_v22, %v563_v23 }
 0x133   : > { %v1252_v25 = vpop.f32.mrf.mxu0 }
 0x134   : > { %1437 = vtanh.f32 %v564_v24 }
 0x135   : > { %v566_v26 = vpop.f32.mrf.mxu0 }
 0x137   : > { %v1253_v27 = vpop.f32.mrf.mxu0 }
 0x141   : > { %v1438_v28 = vpop.eup %1437 }
 0x142   : > { %v570_v29 = vpack.c.bf16 %v1438_v28, %v1438_v28 }
 0x144   : > { %1271 = vmatmul.mubr.bf16.vlgmr.msra.gmra.mxu1 %v570_v29 }
 0x145   : > { %1310 = vmatprep.mubr.msk.bf16.mxu1 %vm1603_vm0, %v1602_v0  ;;  %1295 = vmatpush3.bf16.msra.mxu1 %v1421_v35 }
 0x146   : > { %1296 = vmatprep.subr.bf16.mxu1 %v1602_v0 }
 0x149   : > { %1297 = vmatpush3.bf16.msra.mxu1 %v1422_v36 }
 0x14a   : > { %1298 = vmatprep.subr.bf16.mxu1 %v1602_v0 }
 0x14d   : > { %1299 = vmatpush3.bf16.msra.mxu1 %v1423_v37 }
 0x14e   : > { %1300 = vmatprep.subr.bf16.mxu1 %v1602_v0 }
 0x151   : > { %1301 = vmatpush3.bf16.msra.mxu1 %v1424_v46 }
 0x152   : > { %1302 = vmatprep.subr.bf16.mxu1 %v1602_v0 }
 0x155   : > { %1303 = vmatpush3.bf16.msra.mxu1 %v1425_v47 }
 0x156   : > { %1304 = vmatprep.subr.bf16.mxu1 %v1602_v0 }
 0x159   : > { %1305 = vmatpush3.bf16.msra.mxu1 %v1426_v48 }
 0x15a   : > { %1306 = vmatprep.subr.bf16.mxu1 %v1602_v0 }
 0x15d   : > { %1307 = vmatpush3.bf16.msra.mxu1 %v1427_v49 }
 0x15e   : > { %1308 = vmatprep.subr.bf16.mxu1 %v1602_v0 }
 0x161   : > { %1309 = vmatpush3.bf16.msra.mxu1 %v1428_v50 }
 0x204   : > { %v676_v39 = vpop.f32.mrf.mxu1 }
 0x205   : > { %v677_v40 = vadd.f32 %v1151_v38, %v676_v39 }
 0x206   : > { %v1272_v41 = vpop.f32.mrf.mxu1 }
 0x207   : > { %1439 = vtanh.f32 %v677_v40 }
 0x208   : > { %v679_v42 = vpop.f32.mrf.mxu1 }
 0x20a   : > { %v1273_v43 = vpop.f32.mrf.mxu1 }
 0x214   : > { %v1440_v44 = vpop.eup %1439 }
 0x215   : > { %v683_v45 = vpack.c.bf16 %v1440_v44, %v1440_v44 }
 0x217   : > { %1291 = vmatmul.mubr.bf16.vlgmr.msra.gmra.mxu0 %v683_v45 }
 0x218   : > { %1330 = vmatprep.mubr.msk.bf16.mxu0 %vm1603_vm0, %v1602_v0  ;;  %1315 = vmatpush3.bf16.msra.mxu0 %v1429_v51 }
 0x219   : > { %1316 = vmatprep.subr.bf16.mxu0 %v1602_v0 }
 0x21c   : > { %1317 = vmatpush3.bf16.msra.mxu0 %v1430_v52 }
 0x21d   : > { %1318 = vmatprep.subr.bf16.mxu0 %v1602_v0 }
 0x220   : > { %1319 = vmatpush3.bf16.msra.mxu0 %v1431_v53 }
 0x221   : > { %1320 = vmatprep.subr.bf16.mxu0 %v1602_v0 }
 0x224   : > { %1321 = vmatpush3.bf16.msra.mxu0 %v1432_v62 }
 0x225   : > { %1322 = vmatprep.subr.bf16.mxu0 %v1602_v0 }
 0x228   : > { %1323 = vmatpush3.bf16.msra.mxu0 %v1433_v63 }
 0x229   : > { %1324 = vmatprep.subr.bf16.mxu0 %v1602_v0 }
 0x22c   : > { %1325 = vmatpush3.bf16.msra.mxu0 %v1434_v1 }
 0x22d   : > { %1326 = vmatprep.subr.bf16.mxu0 %v1602_v0 }
 0x230   : > { %1327 = vmatpush3.bf16.msra.mxu0 %v1435_v2 }
 0x231   : > { %1328 = vmatprep.subr.bf16.mxu0 %v1602_v0 }
 0x234   : > { %1329 = vmatpush3.bf16.msra.mxu0 %v1436_v3 }
 0x2d7   : > { %v789_v55 = vpop.f32.mrf.mxu0 }
 0x2d8   : > { %v790_v56 = vadd.f32 %v1160_v54, %v789_v55 }
 0x2d9   : > { %v1292_v57 = vpop.f32.mrf.mxu0 }
 0x2da   : > { %1441 = vtanh.f32 %v790_v56 }
 0x2db   : > { %v792_v58 = vpop.f32.mrf.mxu0 }
 0x2dd   : > { %v1293_v59 = vpop.f32.mrf.mxu0 }
 0x2e7   : > { %v1442_v60 = vpop.eup %1441 }
 0x2e8   : > { %v796_v61 = vpack.c.bf16 %v1442_v60, %v1442_v60 }
 0x2ea   : > { %1311 = vmatmul.mubr.bf16.vlgmr.msra.gmra.mxu1 %v796_v61 }
 0x3aa   : > { %v902_v5 = vpop.f32.mrf.mxu1 }
 0x3ab   : > { %v903_v6 = vadd.f32 %v1169_v4, %v902_v5 }
 0x3ac   : > { %v1312_v7 = vpop.f32.mrf.mxu1 }
 0x3ad   : > { %1443 = vtanh.f32 %v903_v6 }
 0x3ae   : > { %v905_v8 = vpop.f32.mrf.mxu1 }
 0x3b0   : > { %v1313_v9 = vpop.f32.mrf.mxu1 }
 0x3ba   : > { %v1444_v10 = vpop.eup %1443 }
 0x3bb   : > { %v909_v11 = vpack.c.bf16 %v1444_v10, %v1444_v10 }
 0x3bd   : > { %1331 = vmatmul.mubr.bf16.vlgmr.msra.gmra.mxu0 %v909_v11 }
 0x47d   : > { %v1015_v0 = vpop.f32.mrf.mxu0 }
 0x47e   : > { %v1016_v13 = vadd.f32 %v1178_v12, %v1015_v0 }
 0x47f   : > { %v1332_v14 = vpop.f32.mrf.mxu0 }
 0x480   : > { %1021 = vst [vmem:[%s454_s28] sm:$0xff] %v1016_v13 }
 0x481   : > { %v1018_v15 = vpop.f32.mrf.mxu0 }
 0x483   : > { %v1333_v16 = vpop.f32.mrf.mxu0 }
 0x484 PF: > { %s24_s17 = sadd.s32 1, %s1593_s17  }
 0x485   : > { %p21_p3 = scmp.ge.s32.totalorder %s24_s17, 4  }
 0x487   :  { %23 = sbr.rel (!%p21_p3) target bundleno = 3 (0x3), region = 115 }
 0x48c   :  { %1041 = vsyncpa [#allocation3], 1 }
 0x48d   :  { %1043 = vsyncpa [#allocation3 + $0x1], 1 }
 0x48e   :  { %1044 = vsyncpa [#allocation5], 1 }
 0x48f   :  { %1045 = vsyncpa [#allocation8], 1 }

</bundles_post_ra>
